<compile_context>
chip_gen: v6e
topology: v6e:2x2x1
jax: 0.10.0
libtpu: 0.0.40
codegen_flags: <defaults>
</compile_context>

<pallas_src>
import functools

import jax
import jax.numpy as jnp
from jax.experimental import pallas as pl
from jax.experimental.pallas import tpu as pltpu

PREDICTOR_HIDDEN_LAYER_SIZES = (512,)
LEAKY_SLOPE = 0.01          # nn.LeakyReLU default negative_slope
LANE = 128
NEG_INF = -1e30


def _leaky_relu(x):
    return jnp.where(x > 0, x, LEAKY_SLOPE * x)


def _round_up(x, m):
    return (x + m - 1) // m * m


def _pick_batch_tile(B, max_tile=512):
    """Batch tile: full-dim for tiny B, else a multiple of 16 (bf16 packs 16
    sublanes/vreg) giving at least 2 grid steps (feeds both v7x TensorCores)."""
    if B <= 16:
        return B
    return min(max_tile, _round_up(pl.cdiv(B, 2), 16))


def _pick_k_tile(emb_dim, k_cap=4096):
    """Contraction tile over emb_dim.  Full-dim (w1 VMEM-resident) for normal
    sizes; for very large embeddings pick a lane-dense divisor so w1 is
    streamed along K instead of held resident (v7x has only 64 MiB VMEM)."""
    if emb_dim <= k_cap:
        return emb_dim
    for tk in range(k_cap, 127, -128):
        if emb_dim % tk == 0:
            return tk
    return emb_dim   # no clean divisor: keep fully resident


def dann_predictor_kernel(x_ref, w1_ref, b1_ref, w2_ref, b2_ref, o_ref,
                          h_acc=None, *, nk):
    """Fused MLP head. x tile is cast to bf16 in-kernel; f32 accumulation."""

    def finalize(h):
        # LeakyReLU (+ Dropout == identity in eval).
        # TODO(synk): train-mode Dropout (p=0.5) not implemented; matches eval().
        hh = _leaky_relu(h + b1_ref[...])
        # Output Linear; padded class columns of w2 are 0 and b2 is -1e30, so
        # padded logits fall out of the softmax normalizer with no extra mask.
        logits = jnp.dot(hh.astype(jnp.bfloat16), w2_ref[...],
                         preferred_element_type=jnp.float32) + b2_ref[...]
        m = jnp.max(logits, axis=-1, keepdims=True)
        z = logits - m
        lse = jnp.log(jnp.sum(jnp.exp(z), axis=-1, keepdims=True))
        o_ref[...] = (z - lse).astype(o_ref.dtype)

    part = jnp.dot(x_ref[...].astype(jnp.bfloat16), w1_ref[...],
                   preferred_element_type=jnp.float32)

    if nk == 1:
        # emb_dim fits in one K tile: fully fused, no accumulator round-trip.
        finalize(part)
        return

    k = pl.program_id(1)

    @pl.when(k == 0)
    def _():
        h_acc[...] = jnp.zeros_like(h_acc)

    h_acc[...] += part

    @pl.when(k == nk - 1)
    def _():
        finalize(h_acc[...])


def pack_params(params):
    """One-time parameter prep (not a per-call pass):
       - weights cast to bf16 for the MXU (f32 accumulate in-kernel),
       - class dim zero-padded to a lane-dense multiple of 128,
       - class-padding mask baked into b2 (padded columns = -1e30)."""
    H, ncls = params["w2"].shape
    n_pad = _round_up(max(ncls, LANE), LANE)
    w1 = params["w1"].astype(jnp.bfloat16)
    b1 = params["b1"].astype(jnp.float32)
    w2 = jnp.zeros((H, n_pad), jnp.bfloat16).at[:, :ncls].set(
        params["w2"].astype(jnp.bfloat16))
    b2 = jnp.full((1, n_pad), NEG_INF, jnp.float32).at[:, :ncls].set(
        params["b2"].astype(jnp.float32))
    return {"w1": w1, "b1": b1, "w2": w2, "b2": b2, "ncls": ncls}


def dann_predictor(x, packed, *, max_tile=512):
    """Returns padded (B, n_pad) log-probs; slice [:, :ncls] at the consumer
    (lazy under jit) to avoid an eager extra HBM pass."""
    B, emb_dim = x.shape
    w1, b1, w2, b2 = packed["w1"], packed["b1"], packed["w2"], packed["b2"]
    H = w1.shape[1]
    n_pad = w2.shape[1]

    tb = _pick_batch_tile(B, max_tile)
    tk = _pick_k_tile(emb_dim)
    nb = pl.cdiv(B, tb)
    nk = emb_dim // tk

    itm = x.dtype.itemsize
    # VMEM footprint (double-buffered tiles + resident weights + accumulator).
    vmem_bytes = (2 * (tb * tk * itm + tk * H * 2 + tb * n_pad * 4)
                  + H * 4 + H * n_pad * 2 + n_pad * 4
                  + (0 if nk == 1 else tb * H * 4))
    vmem_limit = max(32 << 20, min(64 << 20, int(vmem_bytes * 1.5) + (4 << 20)))

    cost = pl.CostEstimate(
        flops=2 * B * emb_dim * H + 2 * B * H * n_pad,
        transcendentals=B * n_pad,
        bytes_accessed=(x.size * itm + w1.size * 2 + b1.size * 4
                        + w2.size * 2 + b2.size * 4 + B * n_pad * 4),
    )

    scratch = [] if nk == 1 else [pltpu.VMEM((tb, H), jnp.float32)]

    out = pl.pallas_call(
        functools.partial(dann_predictor_kernel, nk=nk),
        out_shape=jax.ShapeDtypeStruct((B, n_pad), jnp.float32),
        grid_spec=pltpu.PrefetchScalarGridSpec(
            num_scalar_prefetch=0,
            grid=(nb, nk),
            in_specs=[
                pl.BlockSpec((tb, tk), lambda i, k: (i, k)),     # x: batch/K tiled
                pl.BlockSpec((tk, H), lambda i, k: (k, 0)),      # w1: resident if nk==1
                pl.BlockSpec((1, H), lambda i, k: (0, 0)),       # b1: VMEM-resident
                pl.BlockSpec((H, n_pad), lambda i, k: (0, 0)),   # w2: VMEM-resident
                pl.BlockSpec((1, n_pad), lambda i, k: (0, 0)),   # b2: VMEM-resident
            ],
            out_specs=pl.BlockSpec((tb, n_pad), lambda i, k: (i, 0)),
            scratch_shapes=scratch,
        ),
        compiler_params=pltpu.CompilerParams(
            dimension_semantics=("parallel", "arbitrary"),
            vmem_limit_bytes=vmem_limit,
        ),
        cost_estimate=cost,
    )(x, w1, b1, w2, b2)
    return out


def init_params(key, emb_dim, ncls_source, hidden=PREDICTOR_HIDDEN_LAYER_SIZES):
    """Deterministic init mimicking nn.Linear (uniform(-1/sqrt(fan_in), 1/sqrt(fan_in)))."""
    dims = [emb_dim, *hidden, ncls_source]
    params = {}
    for i in range(len(dims) - 1):
        fan_in, fan_out = dims[i], dims[i + 1]
        key, kw, kb = jax.random.split(key, 3)
        bound = 1.0 / jnp.sqrt(fan_in)
        # stored as (in, out) == PyTorch weight.T
        params[f"w{i + 1}"] = jax.random.uniform(
            kw, (fan_in, fan_out), jnp.float32, -bound, bound)
        params[f"b{i + 1}"] = jax.random.uniform(
            kb, (1, fan_out), jnp.float32, -bound, bound)
    return params


def reference_forward(x, params):
    """Pure-JAX f32 reference of the PyTorch forward (eval mode, batchnorm=False)."""
    h = _leaky_relu(x @ params["w1"] + params["b1"])
    logits = h @ params["w2"] + params["b2"]
    return jax.nn.log_softmax(logits, axis=1)


if __name__ == "__main__":
    B, EMB_DIM, NCLS = 2, 16, 8
    key = jax.random.PRNGKey(0)
    key, kx = jax.random.split(key)
    x = jax.random.normal(kx, (B, EMB_DIM), jnp.float32)
    params = init_params(key, EMB_DIM, NCLS)

    packed = pack_params(params)            # one-time weight prep
    out_padded = dann_predictor(x, packed)  # (B, n_pad) padded log-probs
    out_padded = jax.block_until_ready(out_padded)
    out = out_padded[:, :NCLS]              # lazy consumer-side slice

    ref = reference_forward(x, params)
    assert out.shape == (B, NCLS), out.shape
    # bf16 matmul inputs with f32 accumulation -> loosened tolerance vs f32 reference.
    assert jnp.allclose(out, ref, atol=3e-2, rtol=3e-2), \
        f"max err {jnp.max(jnp.abs(out - ref))}"
    # log_softmax rows must exponentiate to 1.
    assert jnp.allclose(jnp.sum(jnp.exp(out), axis=1), 1.0, atol=1e-3)
    print("KERNEL_OK")
</pallas_src>

<mosaic_0001>
module attributes {stable_mosaic.version = 11 : i64} {
  func.func @dann_predictor_kernel(%arg0: i32, %arg1: i32, %arg2: memref<2x16xf32, #tpu.memory_space<vmem>>, %arg3: memref<16x512xbf16, #tpu.memory_space<vmem>>, %arg4: memref<1x512xf32, #tpu.memory_space<vmem>>, %arg5: memref<512x128xbf16, #tpu.memory_space<vmem>>, %arg6: memref<1x128xf32, #tpu.memory_space<vmem>>, %arg7: memref<2x128xf32, #tpu.memory_space<vmem>>) attributes {dimension_semantics = [#tpu.dimension_semantics<parallel>, #tpu.dimension_semantics<arbitrary>], iteration_bounds = array<i64: 1, 1>, scalar_prefetch = 0 : i64, scratch_operands = 0 : i64, tpu.core_type = #tpu.core_type<tc>, window_params = [{transform_indices = @transform_0, window_bounds = array<i64: 2, 16>}, {transform_indices = @transform_1, window_bounds = array<i64: 16, 512>}, {pipeline_mode = #tpu.pipeline_mode<synchronous>, transform_indices = @transform_2, window_bounds = array<i64: 1, 512>}, {pipeline_mode = #tpu.pipeline_mode<synchronous>, transform_indices = @transform_3, window_bounds = array<i64: 512, 128>}, {pipeline_mode = #tpu.pipeline_mode<synchronous>, transform_indices = @transform_4, window_bounds = array<i64: 1, 128>}, {transform_indices = @transform_5, window_bounds = array<i64: 2, 128>}]} {
    %c0 = arith.constant 0 : index
    %c0_0 = arith.constant 0 : index
    %0 = vector.load %arg2[%c0, %c0_0] : memref<2x16xf32, #tpu.memory_space<vmem>>, vector<2x16xf32>
    %1 = arith.truncf %0 : vector<2x16xf32> to vector<2x16xbf16>
    %c0_1 = arith.constant 0 : index
    %c0_2 = arith.constant 0 : index
    %2 = vector.load %arg3[%c0_1, %c0_2] : memref<16x512xbf16, #tpu.memory_space<vmem>>, vector<16x512xbf16>
    %cst = arith.constant dense<0.000000e+00> : vector<2x512xf32>
    %3 = tpu.matmul %1, %2, %cst {dimension_numbers = #tpu.dot_dimension_numbers<[1], [0], [0], [1], [0, 0, 1, 1], [], []>} : vector<2x16xbf16>, vector<16x512xbf16>, vector<2x512xf32> -> vector<2x512xf32>
    %c0_3 = arith.constant 0 : index
    %c0_4 = arith.constant 0 : index
    %4 = vector.load %arg4[%c0_3, %c0_4] : memref<1x512xf32, #tpu.memory_space<vmem>>, vector<1x512xf32>
    %5 = vector.broadcast %4 : vector<1x512xf32> to vector<2x512xf32>
    %6 = arith.addf %3, %5 : vector<2x512xf32>
    %cst_5 = arith.constant 0.000000e+00 : f32
    %7 = vector.broadcast %cst_5 : f32 to vector<2x512xf32>
    %8 = arith.cmpf ogt, %6, %7 : vector<2x512xf32>
    %cst_6 = arith.constant 0.00999999977 : f32
    %9 = vector.broadcast %cst_6 : f32 to vector<2x512xf32>
    %10 = arith.mulf %9, %6 : vector<2x512xf32>
    %11 = arith.select %8, %6, %10 : vector<2x512xi1>, vector<2x512xf32>
    %12 = arith.truncf %11 : vector<2x512xf32> to vector<2x512xbf16>
    %c0_7 = arith.constant 0 : index
    %c0_8 = arith.constant 0 : index
    %13 = vector.load %arg5[%c0_7, %c0_8] : memref<512x128xbf16, #tpu.memory_space<vmem>>, vector<512x128xbf16>
    %cst_9 = arith.constant dense<0.000000e+00> : vector<2x128xf32>
    %14 = tpu.matmul %12, %13, %cst_9 {dimension_numbers = #tpu.dot_dimension_numbers<[1], [0], [0], [1], [0, 0, 1, 1], [], []>} : vector<2x512xbf16>, vector<512x128xbf16>, vector<2x128xf32> -> vector<2x128xf32>
    %c0_10 = arith.constant 0 : index
    %c0_11 = arith.constant 0 : index
    %15 = vector.load %arg6[%c0_10, %c0_11] : memref<1x128xf32, #tpu.memory_space<vmem>>, vector<1x128xf32>
    %16 = vector.broadcast %15 : vector<1x128xf32> to vector<2x128xf32>
    %17 = arith.addf %14, %16 : vector<2x128xf32>
    %cst_12 = arith.constant dense<0xFF800000> : vector<2xf32>
    %18 = vector.multi_reduction <maximumf>, %17, %cst_12 [1] : vector<2x128xf32> to vector<2xf32>
    %19 = vector.shape_cast %18 : vector<2xf32> to vector<2x1xf32>
    %20 = vector.broadcast %19 : vector<2x1xf32> to vector<2x128xf32>
    %21 = arith.subf %17, %20 : vector<2x128xf32>
    %22 = math.exp %21 : vector<2x128xf32>
    %cst_13 = arith.constant dense<0.000000e+00> : vector<2xf32>
    %23 = vector.multi_reduction <add>, %22, %cst_13 [1] : vector<2x128xf32> to vector<2xf32>
    %24 = vector.shape_cast %23 : vector<2xf32> to vector<2x1xf32>
    %25 = math.log %24 : vector<2x1xf32>
    %26 = vector.broadcast %25 : vector<2x1xf32> to vector<2x128xf32>
    %27 = arith.subf %21, %26 : vector<2x128xf32>
    %c0_14 = arith.constant 0 : index
    %c0_15 = arith.constant 0 : index
    %28 = vector.load %arg7[%c0_14, %c0_15] : memref<2x128xf32, #tpu.memory_space<vmem>>, vector<2x128xf32>
    tpu.vector_store %arg7[%c0_14, %c0_15], %27 {strides = array<i32>} : memref<2x128xf32, #tpu.memory_space<vmem>>, vector<2x128xf32>,
    return
  }
  func.func @transform_0(%arg0: i32, %arg1: i32) -> (i32, i32) {
    %c0_i32 = arith.constant 0 : i32
    return %arg0, %arg1 : i32, i32
  }
  func.func @transform_1(%arg0: i32, %arg1: i32) -> (i32, i32) {
    %c0_i32 = arith.constant 0 : i32
    %c0_i32_0 = arith.constant 0 : i32
    return %arg1, %c0_i32 : i32, i32
  }
  func.func @transform_2(%arg0: i32, %arg1: i32) -> (i32, i32) {
    %c0_i32 = arith.constant 0 : i32
    %c0_i32_0 = arith.constant 0 : i32
    %c0_i32_1 = arith.constant 0 : i32
    return %c0_i32, %c0_i32_0 : i32, i32
  }
  func.func @transform_3(%arg0: i32, %arg1: i32) -> (i32, i32) {
    %c0_i32 = arith.constant 0 : i32
    %c0_i32_0 = arith.constant 0 : i32
    %c0_i32_1 = arith.constant 0 : i32
    return %c0_i32, %c0_i32_0 : i32, i32
  }
  func.func @transform_4(%arg0: i32, %arg1: i32) -> (i32, i32) {
    %c0_i32 = arith.constant 0 : i32
    %c0_i32_0 = arith.constant 0 : i32
    %c0_i32_1 = arith.constant 0 : i32
    return %c0_i32, %c0_i32_0 : i32, i32
  }
  func.func @transform_5(%arg0: i32, %arg1: i32) -> (i32, i32) {
    %c0_i32 = arith.constant 0 : i32
    %c0_i32_0 = arith.constant 0 : i32
    return %arg0, %c0_i32 : i32, i32
  }
}

</mosaic_0001>

<bundles_post_ra>
// kernel: tpu_custom_call.1
= control target key start
LH: loop header
LB: loop body
LE: loop exit
PB: predicated region body
PF: predicated region fallthrough
CT: control target
= control target key end

     0   :  { %10 = vsyncpa [#allocation3], 0  ;;  %s898_s0 = inlined_call_operand.hbm [shape: f32[2,16], index: 0, kind: input, shape index: {}]   ;;  %s899_s1 = inlined_call_operand.hbm [shape: bf16[16,512], index: 1, kind: input, shape index: {}]   ;;  %s900_s2 = inlined_call_operand.hbm [shape: f32[1,512], index: 2, kind: input, shape index: {}]   ;;  %s901_s3 = inlined_call_operand.hbm [shape: bf16[512,128], index: 3, kind: input, shape index: {}]   ;;  %s902_s4 = inlined_call_operand.vmem [shape: f32[1,128], index: 4, kind: input, shape index: {}]   ;;  %s903_s5 = inlined_call_operand.hbm [shape: f32[2,128], index: 5, kind: output, shape index: {}]  }
   0x1   :  { %11 = vsyncpa [#allocation6], 0 }
   0x2   :  { %12 = vsyncpa [#allocation9], 0 }
   0x3   :  { %13 = vsyncpa [#allocation4], 0  ;;  %s840_s18 = smov [#allocation5]  }
   0x4   :  { %s29_s19 = sshll.u32 %s840_s18, 4  ;;  %s30_s19 = int_to_ptr.vmem [resolvable:$true] %s29_s19 }
   0x5   :  { %s740_s20 = scalar_lea.vmem %s30_s19, 512  ;;  %p745_p1 = scmp.lt.s32.totalorder %s30_s19, %s30_s19 }
   0x6   :  { %p741_p0 = scmp.ne.s32.totalorder %s30_s19, %s740_s20  ;;  %p746_p2 = scmp.lt.s32.totalorder %s740_s20, %s740_s20 }
   0x8   :  { %p747_p3 = por %p746_p2, %p745_p1 }
   0xa   :  { %p748_p4 = pnand %p747_p3, %p741_p0 }
   0xc   :  { %751 = shalt.err (!%p748_p4)
}
   0xd   :  { %s841_s21 = smov 256   ;;  %s842_s22 = smov 16  }
   0xe   :  { %35 = dma.hbm_to_vmem [thread:$0]  %s899_s1, 512, %s30_s19, [#allocation6], %s841_s21, %s841_s21, %s842_s22  }
   0xf   :  { %s843_s25 = smov [#allocation2]   ;;  %s844_s27 = smov [#allocation7]  }
  0x10   :  { %s20_s26 = sshll.u32 %s843_s25, 4  ;;  %s42_s28 = sshll.u32 %s844_s27, 4  ;;  %s21_s26 = int_to_ptr.vmem [resolvable:$true] %s20_s26  ;;  %s43_s28 = int_to_ptr.vmem [resolvable:$true] %s42_s28 }
  0x11   :  { %s760_s29 = scalar_lea.vmem %s21_s26, 32  ;;  %p765_p6 = scmp.lt.s32.totalorder %s21_s26, %s21_s26 }
  0x12   :  { %p761_p5 = scmp.ne.s32.totalorder %s21_s26, %s760_s29  ;;  %p766_p7 = scmp.lt.s32.totalorder %s760_s29, %s760_s29 }
  0x14   :  { %p767_p8 = por %p766_p7, %p765_p6 }
  0x16   :  { %p768_p9 = pnand %p767_p8, %p761_p5 }
  0x18   :  { %771 = shalt.err (!%p768_p9)
}
  0x19   :  { %23 = dma.hbm_to_vmem [thread:$0]  %s898_s0, 32, %s21_s26, [#allocation3]  }
  0x1a   :  { %s780_s7 = scalar_lea.vmem %s43_s28, 64  ;;  %p785_p11 = scmp.lt.s32.totalorder %s43_s28, %s43_s28 }
  0x1b   :  { %p781_p10 = scmp.ne.s32.totalorder %s43_s28, %s780_s7  ;;  %p786_p12 = scmp.lt.s32.totalorder %s780_s7, %s780_s7 }
  0x1d   :  { %p787_p13 = por %p786_p12, %p785_p11 }
  0x1f   :  { %p788_p0 = pnand %p787_p13, %p781_p10 }
  0x21   :  { %791 = shalt.err (!%p788_p0)
}
  0x22   :  { %45 = dma.hbm_to_vmem [thread:$0]  %s900_s2, 64, %s43_s28, [#allocation6]  }
  0x23   :  { %s845_s9 = smov [#allocation8]  }
  0x24   :  { %s51_s10 = sshll.u32 %s845_s9, 4  ;;  %s52_s10 = int_to_ptr.vmem [resolvable:$true] %s51_s10 }
  0x25   :  { %s800_s11 = scalar_lea.vmem %s52_s10, 4096  ;;  %p805_p2 = scmp.lt.s32.totalorder %s52_s10, %s52_s10 }
  0x26   :  { %p801_p1 = scmp.ne.s32.totalorder %s52_s10, %s800_s11  ;;  %p806_p3 = scmp.lt.s32.totalorder %s800_s11, %s800_s11 }
  0x28   :  { %p807_p4 = por %p806_p3, %p805_p2 }
  0x2a   :  { %p808_p5 = pnand %p807_p4, %p801_p1 }
  0x2c   :  { %811 = shalt.err (!%p808_p5)
}
  0x2d   :  { %s846_s0 = smov 64   ;;  %s847_s12 = smov 4  }
  0x2e   :  { %57 = dma.hbm_to_vmem [thread:$0]  %s901_s3, 4096, %s52_s10, [#allocation9], %s846_s0, %s846_s0, %s847_s12  }
  0x2f   :  { %832 = dma.done.wait [#allocation3], 32  }
  0x30   :  { %833 = vsyncadd [#allocation3], 4294967264 }
  0x31   :  { %834 = dma.done.wait [#allocation6], 576  }
  0x32   :  { %835 = vsyncadd [#allocation6], 4294966720 }
  0x33   :  { %836 = dma.done.wait [#allocation9], 4096  }
  0x34   :  { %837 = vsyncadd [#allocation9], 4294963200  ;;  %v848_v0 = vmov 0   ;;  %v690_v1 = vld [vmem:[#allocation5 + $0x4] ss:$16 sps:$4 sm:$0xff]   ;;  %v696_v7 = vld [vmem:[#allocation8 + $0x78] sm:$0xff]   ;;  %v81_v39 = vlaneseq }
  0x35   :  { %157 = vmatprep.mubr.bf16.mxu0 %v848_v0  ;;  %198 = vmatprep.mubr.bf16.mxu1 %v848_v0  ;;  %v692_v2 = vld [vmem:[#allocation5 + $0xc] ss:$16 sps:$4 sm:$0xff]   ;;  %v694_v3 = vld [vmem:[#allocation5] ss:$16 sps:$4 sm:$0xff]   ;;  %v695_v4 = vld [vmem:[#allocation5 + $0x8] ss:$16 sps:$4 sm:$0xff]  }
  0x36   :  { %139 = vmatprep.subr.bf16.mxu0 %v690_v1  ;;  %v73_v5 = vld [vmem:[#allocation2] sm:$0x3]  ;;  %180 = vmatprep.subr.bf16.mxu1 %v692_v2  ;;  %vm121_vm0 = vcmask 130048   ;;  %v700_v11 = vld [vmem:[#allocation8 + $0x70] sm:$0xff]   ;;  %v704_v15 = vld [vmem:[#allocation8 + $0x68] sm:$0xff]   ;;  %v82_v40 = vshrl.u32 %v81_v39, 7 }
  0x37   :  { %v74_v6 = vpack.c.bf16 %v73_v5, %v73_v5  ;;  %140 = vmatpush1.bf16.msra.mxu0 %v694_v3  ;;  %181 = vmatpush1.bf16.msra.mxu1 %v695_v4  ;;  %v697_v8 = vld [vmem:[#allocation8 + $0xf8] sm:$0xff]   ;;  %v701_v12 = vld [vmem:[#allocation8 + $0xf0] sm:$0xff]   ;;  %v705_v16 = vld [vmem:[#allocation8 + $0xe8] sm:$0xff]   ;;  %vm566_vm5 = vcmask 1041408  }
  0x38   :  { %636 = vmatprep.subr.bf16.mxu0 %v696_v7  ;;  %v698_v9 = vld [vmem:[#allocation8 + $0x38] sm:$0xff]   ;;  %658 = vmatprep.subr.bf16.mxu1 %v697_v8  ;;  %v702_v13 = vld [vmem:[#allocation8 + $0x30] sm:$0xff]   ;;  %v706_v17 = vld [vmem:[#allocation8 + $0x28] sm:$0xff]   ;;  %v83_v41 = vsub.s32 0, %v82_v40  ;;  %v91_v42 = vsub.s32 2, %v82_v40  ;;  %v87_v44 = vsub.s32 1, %v82_v40 }
  0x39   :  { %v699_v10 = vld [vmem:[#allocation8 + $0xb8] sm:$0xff]   ;;  %v703_v14 = vld [vmem:[#allocation8 + $0xb0] sm:$0xff]   ;;  %v707_v18 = vld [vmem:[#allocation8 + $0xa8] sm:$0xff]   ;;  %v95_v45 = vsub.s32 3, %v82_v40 }
  0x3a   :  { %601 = vmatmul.mubr.msk.bf16.vlgmr.msra.gmra.mxu0 %vm121_vm0, %v74_v6  ;;  %602 = vmatmul.mubr.msk.bf16.vlgmr.msra.gmra.mxu1 %vm121_vm0, %v74_v6  ;;  %v708_v19 = vld [vmem:[#allocation8 + $0x60] sm:$0xff]   ;;  %v712_v23 = vld [vmem:[#allocation8 + $0x58] sm:$0xff]   ;;  %v716_v27 = vld [vmem:[#allocation8 + $0x50] sm:$0xff]  }
  0x3b   :  { %637 = vmatpush3.bf16.msra.mxu0 %v698_v9  ;;  %659 = vmatpush3.bf16.msra.mxu1 %v699_v10  ;;  %v709_v20 = vld [vmem:[#allocation8 + $0xe0] sm:$0xff]   ;;  %v713_v24 = vld [vmem:[#allocation8 + $0xd8] sm:$0xff]   ;;  %v717_v28 = vld [vmem:[#allocation8 + $0xd0] sm:$0xff]  }
  0x3c   :  { %638 = vmatprep.subr.bf16.mxu0 %v700_v11  ;;  %660 = vmatprep.subr.bf16.mxu1 %v701_v12  ;;  %v710_v21 = vld [vmem:[#allocation8 + $0x20] sm:$0xff]   ;;  %v714_v25 = vld [vmem:[#allocation8 + $0x18] sm:$0xff]   ;;  %v718_v29 = vld [vmem:[#allocation8 + $0x10] sm:$0xff]  }
  0x3d   :  { %v711_v22 = vld [vmem:[#allocation8 + $0xa0] sm:$0xff]   ;;  %v715_v26 = vld [vmem:[#allocation8 + $0x98] sm:$0xff]   ;;  %v719_v30 = vld [vmem:[#allocation8 + $0x90] sm:$0xff]  }
  0x3e   :  { %v720_v31 = vld [vmem:[#allocation8 + $0x48] sm:$0xff]   ;;  %v724_v35 = vld [vmem:[#allocation8 + $0x40] sm:$0xff]   ;;  %v79_v43 = vld [vmem:[#allocation7] sm:$0xf] }
  0x3f   :  { %639 = vmatpush3.bf16.msra.mxu0 %v702_v13  ;;  %661 = vmatpush3.bf16.msra.mxu1 %v703_v14  ;;  %v721_v32 = vld [vmem:[#allocation8 + $0xc8] sm:$0xff]   ;;  %v725_v36 = vld [vmem:[#allocation8 + $0xc0] sm:$0xff]   ;;  %v84_v46 = vrot.slane %v79_v43, %v83_v41  ;;  %v92_v47 = vrot.slane %v79_v43, %v91_v42  ;;  %v88_v50 = vrot.slane %v79_v43, %v87_v44  ;;  %v603_v12 = vld [vmem:[%s902_s4] ss:$0 sm:$0xff]  ;;  %s849_s4 = smov [#allocation10]  }
  0x40   :  { %640 = vmatprep.subr.bf16.mxu0 %v704_v15  ;;  %662 = vmatprep.subr.bf16.mxu1 %v705_v16  ;;  %v722_v33 = vld [vmem:[#allocation8 + $0x8] sm:$0xff]   ;;  %v726_v37 = vld [vmem:[#allocation8] sm:$0xff]   ;;  %v96_v51 = vrot.slane %v79_v43, %v95_v45  ;;  %s586_s15 = sshll.u32 %s849_s4, 4  ;;  %s587_s15 = int_to_ptr.vmem [resolvable:$true] %s586_s15 }
  0x41   :  { %v723_v34 = vld [vmem:[#allocation8 + $0x88] sm:$0xff]   ;;  %v727_v38 = vld [vmem:[#allocation8 + $0x80] sm:$0xff]   ;;  %s812_s16 = scalar_lea.vmem %s587_s15, 32  ;;  %p817_p7 = scmp.lt.s32.totalorder %s587_s15, %s587_s15 }
  0x42   :  { %p813_p6 = scmp.ne.s32.totalorder %s587_s15, %s812_s16  ;;  %p818_p8 = scmp.lt.s32.totalorder %s812_s16, %s812_s16 }
  0x43   :  { %641 = vmatpush3.bf16.msra.mxu0 %v706_v17  ;;  %663 = vmatpush3.bf16.msra.mxu1 %v707_v18 }
  0x44   :  { %642 = vmatprep.subr.bf16.mxu0 %v708_v19  ;;  %664 = vmatprep.subr.bf16.mxu1 %v709_v20  ;;  %p819_p9 = por %p818_p8, %p817_p7 }
  0x46   :  { %p820_p10 = pnand %p819_p9, %p813_p6 }
  0x47   :  { %643 = vmatpush3.bf16.msra.mxu0 %v710_v21  ;;  %665 = vmatpush3.bf16.msra.mxu1 %v711_v22 }
  0x48   :  { %644 = vmatprep.subr.bf16.mxu0 %v712_v23  ;;  %666 = vmatprep.subr.bf16.mxu1 %v713_v24 }
  0x4b   :  { %645 = vmatpush3.bf16.msra.mxu0 %v714_v25  ;;  %667 = vmatpush3.bf16.msra.mxu1 %v715_v26 }
  0x4c   :  { %646 = vmatprep.subr.bf16.mxu0 %v716_v27  ;;  %668 = vmatprep.subr.bf16.mxu1 %v717_v28 }
  0x4f   :  { %647 = vmatpush3.bf16.msra.mxu0 %v718_v29  ;;  %669 = vmatpush3.bf16.msra.mxu1 %v719_v30 }
  0x50   :  { %648 = vmatprep.subr.bf16.mxu0 %v720_v31  ;;  %670 = vmatprep.subr.bf16.mxu1 %v721_v32 }
  0x53   :  { %649 = vmatpush3.bf16.msra.mxu0 %v722_v33  ;;  %671 = vmatpush3.bf16.msra.mxu1 %v723_v34 }
  0x54   :  { %650 = vmatprep.subr.bf16.mxu0 %v724_v35  ;;  %672 = vmatprep.subr.bf16.mxu1 %v725_v36 }
  0x57   :  { %651 = vmatpush3.bf16.msra.mxu0 %v726_v37  ;;  %673 = vmatpush3.bf16.msra.mxu1 %v727_v38 }
  0xfa   :  { %v159_v48 = vpop.f32.mrf.mxu0  ;;  %v200_v49 = vpop.f32.mrf.mxu1 }
  0xfb   :  { %v160_v52 = vadd.f32 %v159_v48, %v84_v46  ;;  %v201_v53 = vadd.f32 %v200_v49, %v92_v47 }
  0xfc   :  { %v161_v54 = vpop.f32.mrf.mxu0  ;;  %v202_v55 = vpop.f32.mrf.mxu1 }
  0xfd   :  { %v211_v56 = vmul.f32 0.01, %v160_v52  ;;  %vm207_vm1 = vcmp.gt.f32.partialorder %v160_v52, 0.0  ;;  %v213_v57 = vmul.f32 0.01, %v201_v53  ;;  %v162_v58 = vadd.f32 %v161_v54, %v88_v50 }
  0xfe   :  { %v203_v59 = vadd.f32 %v202_v55, %v96_v51  ;;  %v163_v60 = vpop.f32.mrf.mxu0  ;;  %v204_v61 = vpop.f32.mrf.mxu1  ;;  %vm209_vm2 = vcmp.gt.f32.partialorder %v201_v53, 0.0 }
  0xff   :  { %vm208_vm3 = vcmp.gt.f32.partialorder %v162_v58, 0.0  ;;  %v212_v62 = vmul.f32 0.01, %v162_v58  ;;  %v215_v1 = vsel %vm207_vm1, %v160_v52, %v211_v56  ;;  %v217_v3 = vsel %vm209_vm2, %v201_v53, %v213_v57 }
 0x100   :  { %v164_v63 = vpop.f32.mrf.mxu0  ;;  %v205_v0 = vpop.f32.mrf.mxu1  ;;  %vm210_vm4 = vcmp.gt.f32.partialorder %v203_v59, 0.0  ;;  %v214_v2 = vmul.f32 0.01, %v203_v59  ;;  %v219_v7 = vpack.c.bf16 %v215_v1, %v215_v1  ;;  %v221_v9 = vpack.c.bf16 %v217_v3, %v217_v3 }
 0x101   :  { %v216_v4 = vsel %vm208_vm3, %v162_v58, %v212_v62 }
 0x102   :  { %v220_v5 = vpack.c.bf16 %v216_v4, %v216_v4  ;;  %v218_v6 = vsel %vm210_vm4, %v203_v59, %v214_v2 }
 0x103   :  { %v222_v8 = vpack.c.bf16 %v218_v6, %v218_v6 }
 0x104   :  { %518 = vmatprep.mubr.bf16.mxu0 %v220_v5 }
 0x105   :  { %558 = vmatprep.mubr.bf16.mxu1 %v222_v8  ;;  %519 = vmatmul.mubr.bf16.vlgmr.msra.gmra.mxu0 %v219_v7 }
 0x106   :  { %559 = vmatmul.mubr.bf16.vlgmr.msra.gmra.mxu1 %v221_v9 }
 0x1c5   :  { %v652_v10 = vpop.f32.mrf.mxu0 }
 0x1c6   :  { %v674_v11 = vpop.f32.mrf.mxu1 }
 0x1c7   :  { %v653_v13 = vpop.f32.mrf.mxu0 }
 0x1c8   :  { %v654_v14 = vadd.f32 %v653_v13, %v652_v10  ;;  %v675_v15 = vpop.f32.mrf.mxu1 }
 0x1c9   :  { %v655_v16 = vpop.f32.mrf.mxu0  ;;  %v676_v18 = vadd.f32 %v675_v15, %v674_v11 }
 0x1ca   :  { %v521_v17 = vadd.f32 %v654_v14, %v603_v12  ;;  %v677_v19 = vpop.f32.mrf.mxu1 }
 0x1cb   :  { %v656_v20 = vpop.f32.mrf.mxu0 }
 0x1cc   :  { %v678_v21 = vpop.f32.mrf.mxu1  ;;  %v561_v22 = vadd.f32 %v676_v18, %v521_v17 }
 0x1ce   :  { %v567_v23 = vsel %vm566_vm5, %v561_v22, -inf }
 0x1cf   :  { %568 = vmax.xlane.f32.xlu0 %v567_v23 }
 0x258   :  { %v569_v24 = vpop.xlane.xlu0 %568 }
 0x259   :  { %v570_v25 = vsub.f32 %v561_v22, %v569_v24 }
 0x25b   :  { %v571_v26 = vmul.f32 1.442695, %v570_v25 }
 0x25d   :  { %728 = vpow2.f32 %v571_v26 }
 0x26a   :  { %v729_v27 = vpop.eup %728 }
 0x26b   :  { %v573_v28 = vsel %vm566_vm5, %v729_v27, 0.0 }
 0x26c   :  { %574 = vadd.xlane.f32.xlu0 %v573_v28 }
 0x2f5   :  { %v575_v29 = vpop.xlane.xlu0 %574 }
 0x2f6   :  { %730 = vlog2.f32 %v575_v29 }
 0x303   :  { %v731_v30 = vpop.eup %730 }
 0x304   :  { %v577_v31 = vmul.f32 0.6931472, %v731_v30 }
 0x306   :  { %v578_v32 = vsub.f32 %v570_v25, %v577_v31 }
 0x308   :  { %579 = vst [vmem:[#allocation10] sm:$0x3] %v578_v32 }
 0x309   :  { %823 = shalt.err (!%p820_p10)
}
 0x30a   :  { %589 = dma.vmem_to_hbm [thread:$0]  %s587_s15, 32, %s903_s5, [#allocation4]  }
 0x30b   :  { %838 = dma.done.wait [#allocation4], 32  }
 0x30c   :  { %839 = vsyncadd [#allocation4], 4294967264 }
 0x30d   :  { %593 = vsyncpa [#allocation3], 1 }
 0x30e   :  { %594 = vsyncpa [#allocation6], 1 }
 0x30f   :  { %595 = vsyncpa [#allocation9], 1 }
 0x310   :  { %596 = vsyncpa [#allocation4], 1 }

</bundles_post_ra>
